<compile_context>
chip_gen: v7x
topology: tpu7x:2x2x1
jax: 0.10.0
libtpu: 0.0.40
codegen_flags: <defaults>
</compile_context>

<pallas_src>
import numpy as np

import jax
import jax.numpy as jnp
from jax import lax
from jax.experimental import pallas as pl
from jax.experimental.pallas import tpu as pltpu

LN_EPS = 1e-5        # torch.nn.LayerNorm default
LANE = 128
SUBLANE = 8


def _round_up(n, m):
    return ((n + m - 1) // m) * m


# ---------------------------------------------------------------------------
# One-time parameter preprocessing (hoisted out of the forward pass).
# ---------------------------------------------------------------------------
def prepare_params(raw_params, *, kernel_size):
    """raw_params: list of (weight (C_out, C_in, K), bias (C_out,), gamma (C_out,), beta (C_out,))
    in PyTorch Conv1d / LayerNorm layout.

    Returns a dict with, per layer:
      W  (K, C_pad, C_pad)  bf16   (input-channel rows >= C_in and output columns >= C_out are 0)
      b, gamma, beta  (1, C_pad)  f32  (padded lanes are 0)
    C_pad = round_up(max channel count, 128).  Zero padding never changes the math and keeps
    every in-kernel load / store / matmul lane-dense.
    """
    n_layers = len(raw_params)
    c_outs = [int(w.shape[0]) for (w, _, _, _) in raw_params]
    assert all(c == c_outs[0] for c in c_outs), \
        "ConvLNorms1d: all layers must share out_channels (module guarantee)"
    for li in range(1, n_layers):
        assert int(raw_params[li][0].shape[1]) == c_outs[0], \
            "layer l>0 in_channels must equal out_channels"
    c_out = c_outs[0]
    c_max = max(max(int(w.shape[0]), int(w.shape[1])) for (w, _, _, _) in raw_params)
    c_pad = _round_up(c_max, LANE)

    flat = []
    for (w, b, g, beta) in raw_params:
        co, ci, k = w.shape
        assert k == kernel_size
        wt = jnp.transpose(w, (2, 1, 0))                                   # (K, C_in, C_out)
        wt = jnp.pad(wt, ((0, 0), (0, c_pad - ci), (0, c_pad - co)))       # (K, C_pad, C_pad)

        def _vec(v):
            return jnp.pad(v, (0, c_pad - co)).reshape(1, c_pad).astype(jnp.float32)

        flat += [wt.astype(jnp.bfloat16), _vec(b), _vec(g), _vec(beta)]

    return {"flat": flat, "n_layers": n_layers, "kernel_size": kernel_size,
            "c_out": c_out, "c_pad": c_pad}


# ---------------------------------------------------------------------------
# pltpu.roll convention probe (run once per dtype).  Verifies the rotation direction against
# np.roll; if roll is unavailable/odd for this dtype we fall back to slice+concat.
# ---------------------------------------------------------------------------
_ROLL_SIGN = {}   # dtype name -> +1 (== jnp.roll), -1 (reversed), 0 (use slice fallback)


def _roll_sign(dtype):
    key = jnp.dtype(dtype).name
    if key not in _ROLL_SIGN:
        sign = 0
        try:
            def probe(x_ref, o_ref):
                o_ref[...] = pltpu.roll(x_ref[...], shift=1, axis=0)

            x = (jnp.arange(32, dtype=jnp.float32)[:, None]
                 * jnp.ones((1, LANE), jnp.float32)).astype(dtype)
            y = np.asarray(pl.pallas_call(
                probe, out_shape=jax.ShapeDtypeStruct((32, LANE), jnp.dtype(dtype)))(x)
            ).astype(np.float32)
            xn = np.asarray(x).astype(np.float32)
            if np.allclose(y, np.roll(xn, 1, axis=0)):
                sign = 1
            elif np.allclose(y, np.roll(xn, -1, axis=0)):
                sign = -1
        except Exception:
            sign = 0
        _ROLL_SIGN[key] = sign
    return _ROLL_SIGN[key]


def _pick_batch_tile(B, rows, c_pad, elsize, *, min_steps=4, scratch_budget=4 << 20):
    """Largest batch packing Bt (divisor of B) that keeps >= min_steps grid steps
    (pipeline depth / megacore sharding) and the ping-pong scratch under scratch_budget."""
    bt = 1
    for cand in range(1, B + 1):
        if B % cand:
            continue
        if (B // cand) < min(min_steps, B):
            continue
        if 2 * cand * rows * c_pad * elsize > scratch_budget:
            continue
        bt = cand
    return bt


# ---------------------------------------------------------------------------
# Fused forward
# ---------------------------------------------------------------------------
def conv_lnorms_1d(x, params, *, batch_tile=None, compute_dtype=jnp.bfloat16):
    """Fused ConvLNorms1d forward.  x: (B, T, C_in) channels-last, params from prepare_params().
    Dropout = identity (eval mode).  stride = dilation = 1 (module defaults)."""
    flat = params["flat"]
    n_layers = params["n_layers"]
    K = params["kernel_size"]
    c_out = params["c_out"]
    c_pad = params["c_pad"]
    assert K % 2 == 1
    # TODO(synk): stride != 1 / dilation != 1 not implemented (module defaults are 1).

    B, T, C_in = x.shape
    pad = (K - 1) // 2
    cdt = jnp.dtype(compute_dtype)
    # Circular halo only needs `pad` zero rows; round to 16 so bf16 sublane packing stays tidy.
    ROWS = _round_up(T + pad, 2 * SUBLANE)

    Bt = batch_tile if batch_tile is not None else _pick_batch_tile(B, ROWS, c_pad, cdt.itemsize)
    assert B % Bt == 0
    NROWS = Bt * ROWS
    inv_cout = 1.0 / c_out
    roll_sign = _roll_sign(cdt)

    def tap(act, d):
        """tap[t, :] == act[(t + d) % NROWS, :]  (static offset d)."""
        d = d % NROWS
        if d == 0:
            return act
        if roll_sign != 0:
            return pltpu.roll(act, shift=(-roll_sign * d) % NROWS, axis=0)   # XLU, cheap
        return jnp.concatenate([act[d:, :], act[:d, :]], axis=0)            # fallback

    def kernel(x_ref, *args):
        param_refs = args[: 4 * n_layers]
        o_ref = args[4 * n_layers]
        buf_a, buf_b = args[4 * n_layers + 1], args[4 * n_layers + 2]

        # Load the input slots into buf_a.  The dense per-slot zero store keeps the halo rows
        # [T, ROWS) and the padded lanes [C_in, C_pad) exactly 0 (required by the circular taps,
        # and safe against stale-NaN VMEM), then the small x tile is overlaid.
        # buf_b is never pre-zeroed: it is always fully written (dense, masked rows) before read.
        zero_slot = jnp.zeros((ROWS, c_pad), cdt)
        for i in range(Bt):
            buf_a[i * ROWS:(i + 1) * ROWS, :] = zero_slot
            buf_a[i * ROWS:i * ROWS + T, 0:C_in] = x_ref[i].astype(cdt)

        # Per-slot valid-row mask (halo rows of every batch slot must stay zero between layers).
        valid_row = (lax.broadcasted_iota(jnp.int32, (NROWS, 1), 0) % ROWS) < T

        src, dst = buf_a, buf_b
        for layer in range(n_layers):
            w_ref, b_ref, g_ref, beta_ref = param_refs[4 * layer: 4 * layer + 4]
            act = src[...]                                           # (NROWS, C_pad) bf16

            # K-tap 'same' conv as K accumulated MXU dots: bf16 operands, f32 accumulation.
            y = None
            for k in range(K):
                part = jnp.dot(tap(act, k - pad), w_ref[k],
                               preferred_element_type=jnp.float32)   # (NROWS, C_pad) f32
                y = part if y is None else y + part
            y = y + b_ref[...]                                       # conv bias (f32)
            y = jnp.maximum(y, 0.0)                                  # ReLU

            # LayerNorm over the real C_out channels (padded lanes are exactly 0, so they do not
            # perturb the sums; divisor stays 1/C_out).  One-pass stats in f32.
            s1 = jnp.sum(y, axis=-1, keepdims=True)
            s2 = jnp.sum(y * y, axis=-1, keepdims=True)
            mean = s1 * inv_cout
            var = jnp.maximum(s2 * inv_cout - mean * mean, 0.0)
            y = (y - mean) * lax.rsqrt(var + LN_EPS)
            y = y * g_ref[...] + beta_ref[...]        # padded gamma/beta are 0 -> lanes stay 0
            # Dropout: identity in eval mode.

            if layer == n_layers - 1:
                for i in range(Bt):
                    o_ref[i] = y[i * ROWS:i * ROWS + T, 0:c_out].astype(o_ref.dtype)
            else:
                y = jnp.where(valid_row, y, 0.0)                     # re-zero per-slot halo rows
                dst[...] = y.astype(cdt)                             # full-lane dense store
                src, dst = dst, src

    param_specs = [pl.BlockSpec(p.shape, (lambda b, nd=p.ndim: (0,) * nd)) for p in flat]

    # Explicit VMEM budget: 2 ping-pong buffers + double-buffered I/O blocks + 2x params.
    need = (2 * NROWS * c_pad * cdt.itemsize
            + 2 * Bt * T * (C_in + c_out) * x.dtype.itemsize
            + 2 * sum(int(np.prod(p.shape)) * p.dtype.itemsize for p in flat))
    vmem_limit = int(min(max(2 * need + (8 << 20), 32 << 20), 64 << 20))
    # (For very large T, a T-tile grid axis with an n_layers*pad halo would be needed on v7x.)

    return pl.pallas_call(
        kernel,
        out_shape=jax.ShapeDtypeStruct((B, T, c_out), x.dtype),
        grid_spec=pltpu.PrefetchScalarGridSpec(
            num_scalar_prefetch=0,
            grid=(B // Bt,),                                         # batch grid: no conv halo
            in_specs=[pl.BlockSpec((Bt, T, C_in), lambda b: (b, 0, 0))] + param_specs,
            out_specs=pl.BlockSpec((Bt, T, c_out), lambda b: (b, 0, 0)),
            scratch_shapes=[
                pltpu.VMEM((NROWS, c_pad), cdt),                     # ping
                pltpu.VMEM((NROWS, c_pad), cdt),                     # pong
            ],
        ),
        compiler_params=pltpu.CompilerParams(
            dimension_semantics=("parallel",),                       # shard batch across TCs
            vmem_limit_bytes=vmem_limit,
        ),
    )(x, *flat)


# ---------------------------------------------------------------------------
# Pure-JAX reference (mirrors the PyTorch module in eval mode).
# matmul_dtype=None -> exact f32 semantics; matmul_dtype=bf16 -> mirrors the kernel's MXU
# operand rounding (f32 accumulation, f32 LayerNorm), for a tight correctness comparison.
# ---------------------------------------------------------------------------
def _reference(x, raw_params, kernel_size, matmul_dtype=None):
    pad = (kernel_size - 1) // 2
    y = x
    for (w, b, g, beta) in raw_params:
        if matmul_dtype is not None:
            yc, wc, prec = y.astype(matmul_dtype), w.astype(matmul_dtype), None
        else:
            yc, wc, prec = y, w, lax.Precision.HIGHEST
        xp = jnp.pad(yc, ((0, 0), (pad, pad), (0, 0)))
        T = y.shape[1]
        acc = b[None, None, :].astype(jnp.float32)
        for k in range(kernel_size):
            acc = acc + jnp.einsum("btc,oc->bto", xp[:, k:k + T, :], wc[:, :, k],
                                   preferred_element_type=jnp.float32, precision=prec)
        r = jnp.maximum(acc, 0.0)
        mean = r.mean(-1, keepdims=True)
        var = ((r - mean) ** 2).mean(-1, keepdims=True)
        y = (r - mean) / jnp.sqrt(var + LN_EPS) * g + beta
    return y


if __name__ == "__main__":
    # Small config consistent with the module: n_layers=2, odd kernel, stride=dilation=1.
    B, T = 2, 16
    in_channels, out_channels = 4, 8
    kernel_size = 3
    n_layers = 2

    key = jax.random.PRNGKey(0)
    key, kx = jax.random.split(key)
    x = jax.random.normal(kx, (B, T, in_channels), dtype=jnp.float32)

    # Deterministic synthetic parameters (torch Conv1d / LayerNorm layouts).
    raw_params = []
    c_in = in_channels
    for _ in range(n_layers):
        key, kw, kb, kg, kbt = jax.random.split(key, 5)
        w = 0.1 * jax.random.normal(kw, (out_channels, c_in, kernel_size), dtype=jnp.float32)
        b = 0.1 * jax.random.normal(kb, (out_channels,), dtype=jnp.float32)
        gamma = 1.0 + 0.1 * jax.random.normal(kg, (out_channels,), dtype=jnp.float32)
        beta = 0.1 * jax.random.normal(kbt, (out_channels,), dtype=jnp.float32)
        raw_params.append((w, b, gamma, beta))
        c_in = out_channels

    params = prepare_params(raw_params, kernel_size=kernel_size)      # one-time prep

    out = conv_lnorms_1d(x, params)
    out = jax.block_until_ready(out)
    assert out.shape == (B, T, out_channels)

    # Tight check vs a reference that mirrors the kernel's bf16 MXU operand rounding.
    ref_bf16 = _reference(x, raw_params, kernel_size, matmul_dtype=jnp.bfloat16)
    assert jnp.allclose(out, ref_bf16, atol=1e-2, rtol=1e-2), "mismatch vs bf16-compute reference"

    # Sanity vs full-f32 module semantics (difference is bf16 matmul rounding only).
    ref_f32 = _reference(x, raw_params, kernel_size)
    max_diff = float(jnp.max(jnp.abs(out - ref_f32)))
    assert max_diff < 1.0, f"gross deviation from f32 reference: {max_diff}"
    print(f"max |kernel - f32_ref| = {max_diff:.3e} (bf16 MXU rounding)")

    print("KERNEL_OK")
</pallas_src>

<mosaic_0001>
module attributes {stable_mosaic.version = 11 : i64} {
  func.func @probe(%arg0: memref<32x128xbf16, #tpu.memory_space<vmem>>, %arg1: memref<32x128xbf16, #tpu.memory_space<vmem>>) attributes {dimension_semantics = [], scalar_prefetch = 0 : i64, scratch_operands = 0 : i64, tpu.core_type = #tpu.core_type<tc>} {
    %c0 = arith.constant 0 : index
    %c0_0 = arith.constant 0 : index
    %0 = vector.load %arg0[%c0, %c0_0] : memref<32x128xbf16, #tpu.memory_space<vmem>>, vector<32x128xbf16>
    %c1_i32 = arith.constant 1 : i32
    %1 = tpu.dynamic_rotate %0 by %c1_i32 dim 0 : vector<32x128xbf16>, i32 -> vector<32x128xbf16>
    %c0_1 = arith.constant 0 : index
    %c0_2 = arith.constant 0 : index
    %2 = vector.load %arg1[%c0_1, %c0_2] : memref<32x128xbf16, #tpu.memory_space<vmem>>, vector<32x128xbf16>
    tpu.vector_store %arg1[%c0_1, %c0_2], %1 {strides = array<i32>} : memref<32x128xbf16, #tpu.memory_space<vmem>>, vector<32x128xbf16>,
    return
  }
}

module attributes {stable_mosaic.version = 11 : i64} {
  func.func @kernel(%arg0: i32, %arg1: memref<1x16x4xf32, #tpu.memory_space<vmem>>, %arg2: memref<3x128x128xbf16, #tpu.memory_space<vmem>>, %arg3: memref<1x128xf32, #tpu.memory_space<vmem>>, %arg4: memref<1x128xf32, #tpu.memory_space<vmem>>, %arg5: memref<1x128xf32, #tpu.memory_space<vmem>>, %arg6: memref<3x128x128xbf16, #tpu.memory_space<vmem>>, %arg7: memref<1x128xf32, #tpu.memory_space<vmem>>, %arg8: memref<1x128xf32, #tpu.memory_space<vmem>>, %arg9: memref<1x128xf32, #tpu.memory_space<vmem>>, %arg10: memref<1x16x8xf32, #tpu.memory_space<vmem>>, %arg11: memref<32x128xbf16, #tpu.memory_space<vmem>>, %arg12: memref<32x128xbf16, #tpu.memory_space<vmem>>) attributes {dimension_semantics = [#tpu.dimension_semantics<parallel>], iteration_bounds = array<i64: 2>, scalar_prefetch = 0 : i64, scratch_operands = 2 : i64, tpu.core_type = #tpu.core_type<tc>, window_params = [{transform_indices = @transform_0, window_bounds = array<i64: 1, 16, 4>}, {pipeline_mode = #tpu.pipeline_mode<synchronous>, transform_indices = @transform_1, window_bounds = array<i64: 3, 128, 128>}, {pipeline_mode = #tpu.pipeline_mode<synchronous>, transform_indices = @transform_2, window_bounds = array<i64: 1, 128>}, {pipeline_mode = #tpu.pipeline_mode<synchronous>, transform_indices = @transform_3, window_bounds = array<i64: 1, 128>}, {pipeline_mode = #tpu.pipeline_mode<synchronous>, transform_indices = @transform_4, window_bounds = array<i64: 1, 128>}, {pipeline_mode = #tpu.pipeline_mode<synchronous>, transform_indices = @transform_5, window_bounds = array<i64: 3, 128, 128>}, {pipeline_mode = #tpu.pipeline_mode<synchronous>, transform_indices = @transform_6, window_bounds = array<i64: 1, 128>}, {pipeline_mode = #tpu.pipeline_mode<synchronous>, transform_indices = @transform_7, window_bounds = array<i64: 1, 128>}, {pipeline_mode = #tpu.pipeline_mode<synchronous>, transform_indices = @transform_8, window_bounds = array<i64: 1, 128>}, {transform_indices = @transform_9, window_bounds = array<i64: 1, 16, 8>}]} {
    %cst = arith.constant 0.000000e+00 : bf16
    %0 = vector.broadcast %cst : bf16 to vector<32x128xbf16>
    %c0 = arith.constant 0 : index
    %c0_0 = arith.constant 0 : index
    %1 = vector.load %arg11[%c0, %c0_0] : memref<32x128xbf16, #tpu.memory_space<vmem>>, vector<32x128xbf16>
    tpu.vector_store %arg11[%c0, %c0_0], %0 {strides = array<i32>} : memref<32x128xbf16, #tpu.memory_space<vmem>>, vector<32x128xbf16>,
    %c0_1 = arith.constant 0 : index
    %c0_2 = arith.constant 0 : index
    %c0_3 = arith.constant 0 : index
    %2 = vector.load %arg1[%c0_1, %c0_2, %c0_3] : memref<1x16x4xf32, #tpu.memory_space<vmem>>, vector<1x16x4xf32>
    %3 = vector.shape_cast %2 : vector<1x16x4xf32> to vector<16x4xf32>
    %4 = arith.truncf %3 : vector<16x4xf32> to vector<16x4xbf16>
    %c0_4 = arith.constant 0 : index
    %c0_5 = arith.constant 0 : index
    %5 = vector.load %arg11[%c0_4, %c0_5] : memref<32x128xbf16, #tpu.memory_space<vmem>>, vector<16x4xbf16>
    tpu.vector_store %arg11[%c0_4, %c0_5], %4 {strides = array<i32>} : memref<32x128xbf16, #tpu.memory_space<vmem>>, vector<16x4xbf16>,
    %6 = tpu.iota {dimensions = array<i32: 0>} : vector<32x1xi32>
    %c32_i32 = arith.constant 32 : i32
    %c0_i32 = arith.constant 0 : i32
    %7 = arith.cmpi eq, %c32_i32, %c0_i32 : i32
    %c1_i32 = arith.constant 1 : i32
    %8 = arith.select %7, %c1_i32, %c32_i32 : i32
    %9 = vector.broadcast %8 : i32 to vector<32x1xi32>
    %10 = arith.remsi %6, %9 : vector<32x1xi32>
    %c0_i32_6 = arith.constant 0 : i32
    %11 = vector.broadcast %c0_i32_6 : i32 to vector<32x1xi32>
    %12 = arith.cmpi ne, %10, %11 : vector<32x1xi32>
    %c0_i32_7 = arith.constant 0 : i32
    %13 = vector.broadcast %c0_i32_7 : i32 to vector<32x1xi32>
    %14 = arith.cmpi slt, %10, %13 : vector<32x1xi32>
    %c0_i32_8 = arith.constant 0 : i32
    %15 = arith.cmpi slt, %8, %c0_i32_8 : i32
    %16 = vector.broadcast %15 : i1 to vector<32x1xi1>
    %17 = vector.broadcast %16 : vector<32x1xi1> to vector<32x1xi1>
    %18 = arith.xori %14, %17 : vector<32x1xi1>
    %19 = arith.andi %18, %12 : vector<32x1xi1>
    %20 = vector.broadcast %8 : i32 to vector<32x1xi32>
    %21 = arith.addi %10, %20 : vector<32x1xi32>
    %22 = arith.select %19, %21, %10 : vector<32x1xi1>, vector<32x1xi32>
    %c16_i32 = arith.constant 16 : i32
    %23 = vector.broadcast %c16_i32 : i32 to vector<32x1xi32>
    %24 = arith.cmpi slt, %22, %23 : vector<32x1xi32>
    %c0_9 = arith.constant 0 : index
    %c0_10 = arith.constant 0 : index
    %25 = vector.load %arg11[%c0_9, %c0_10] : memref<32x128xbf16, #tpu.memory_space<vmem>>, vector<32x128xbf16>
    %26 = vector.extract_strided_slice %25 {offsets = [31, 0], sizes = [1, 128], strides = [1, 1]} : vector<32x128xbf16> to vector<1x128xbf16>
    %27 = vector.extract_strided_slice %25 {offsets = [0, 0], sizes = [31, 128], strides = [1, 1]} : vector<32x128xbf16> to vector<31x128xbf16>
    %28 = tpu.concatenate %26, %27 in 0 : vector<1x128xbf16>, vector<31x128xbf16> -> vector<32x128xbf16>
    %c0_11 = arith.constant 0 : index
    %c0_12 = arith.constant 0 : index
    %c0_13 = arith.constant 0 : index
    %29 = vector.load %arg2[%c0_11, %c0_12, %c0_13] : memref<3x128x128xbf16, #tpu.memory_space<vmem>>, vector<1x128x128xbf16>
    %30 = vector.shape_cast %29 : vector<1x128x128xbf16> to vector<128x128xbf16>
    %cst_14 = arith.constant dense<0.000000e+00> : vector<32x128xf32>
    %31 = tpu.matmul %28, %30, %cst_14 {dimension_numbers = #tpu.dot_dimension_numbers<[1], [0], [0], [1], [0, 0, 1, 1], [], []>} : vector<32x128xbf16>, vector<128x128xbf16>, vector<32x128xf32> -> vector<32x128xf32>
    %c1 = arith.constant 1 : index
    %c0_15 = arith.constant 0 : index
    %c0_16 = arith.constant 0 : index
    %32 = vector.load %arg2[%c1, %c0_15, %c0_16] : memref<3x128x128xbf16, #tpu.memory_space<vmem>>, vector<1x128x128xbf16>
    %33 = vector.shape_cast %32 : vector<1x128x128xbf16> to vector<128x128xbf16>
    %cst_17 = arith.constant dense<0.000000e+00> : vector<32x128xf32>
    %34 = tpu.matmul %25, %33, %cst_17 {dimension_numbers = #tpu.dot_dimension_numbers<[1], [0], [0], [1], [0, 0, 1, 1], [], []>} : vector<32x128xbf16>, vector<128x128xbf16>, vector<32x128xf32> -> vector<32x128xf32>
    %35 = arith.addf %31, %34 : vector<32x128xf32>
    %36 = vector.extract_strided_slice %25 {offsets = [1, 0], sizes = [31, 128], strides = [1, 1]} : vector<32x128xbf16> to vector<31x128xbf16>
    %37 = vector.extract_strided_slice %25 {offsets = [0, 0], sizes = [1, 128], strides = [1, 1]} : vector<32x128xbf16> to vector<1x128xbf16>
    %38 = tpu.concatenate %36, %37 in 0 : vector<31x128xbf16>, vector<1x128xbf16> -> vector<32x128xbf16>
    %c2 = arith.constant 2 : index
    %c0_18 = arith.constant 0 : index
    %c0_19 = arith.constant 0 : index
    %39 = vector.load %arg2[%c2, %c0_18, %c0_19] : memref<3x128x128xbf16, #tpu.memory_space<vmem>>, vector<1x128x128xbf16>
    %40 = vector.shape_cast %39 : vector<1x128x128xbf16> to vector<128x128xbf16>
    %cst_20 = arith.constant dense<0.000000e+00> : vector<32x128xf32>
    %41 = tpu.matmul %38, %40, %cst_20 {dimension_numbers = #tpu.dot_dimension_numbers<[1], [0], [0], [1], [0, 0, 1, 1], [], []>} : vector<32x128xbf16>, vector<128x128xbf16>, vector<32x128xf32> -> vector<32x128xf32>
    %42 = arith.addf %35, %41 : vector<32x128xf32>
    %c0_21 = arith.constant 0 : index
    %c0_22 = arith.constant 0 : index
    %43 = vector.load %arg3[%c0_21, %c0_22] : memref<1x128xf32, #tpu.memory_space<vmem>>, vector<1x128xf32>
    %44 = vector.broadcast %43 : vector<1x128xf32> to vector<32x128xf32>
    %45 = arith.addf %42, %44 : vector<32x128xf32>
    %cst_23 = arith.constant 0.000000e+00 : f32
    %46 = vector.broadcast %cst_23 : f32 to vector<32x128xf32>
    %47 = arith.maximumf %45, %46 : vector<32x128xf32>
    %cst_24 = arith.constant dense<0.000000e+00> : vector<32xf32>
    %48 = vector.multi_reduction <add>, %47, %cst_24 [1] : vector<32x128xf32> to vector<32xf32>
    %49 = vector.shape_cast %48 : vector<32xf32> to vector<32x1xf32>
    %50 = arith.mulf %47, %47 : vector<32x128xf32>
    %cst_25 = arith.constant dense<0.000000e+00> : vector<32xf32>
    %51 = vector.multi_reduction <add>, %50, %cst_25 [1] : vector<32x128xf32> to vector<32xf32>
    %52 = vector.shape_cast %51 : vector<32xf32> to vector<32x1xf32>
    %cst_26 = arith.constant 1.250000e-01 : f32
    %53 = vector.broadcast %cst_26 : f32 to vector<32x1xf32>
    %54 = arith.mulf %49, %53 : vector<32x1xf32>
    %cst_27 = arith.constant 1.250000e-01 : f32
    %55 = vector.broadcast %cst_27 : f32 to vector<32x1xf32>
    %56 = arith.mulf %52, %55 : vector<32x1xf32>
    %57 = arith.mulf %54, %54 : vector<32x1xf32>
    %58 = arith.subf %56, %57 : vector<32x1xf32>
    %cst_28 = arith.constant 0.000000e+00 : f32
    %59 = vector.broadcast %cst_28 : f32 to vector<32x1xf32>
    %60 = arith.maximumf %58, %59 : vector<32x1xf32>
    %61 = vector.broadcast %54 : vector<32x1xf32> to vector<32x128xf32>
    %62 = arith.subf %47, %61 : vector<32x128xf32>
    %cst_29 = arith.constant 9.99999974E-6 : f32
    %63 = vector.broadcast %cst_29 : f32 to vector<32x1xf32>
    %64 = arith.addf %60, %63 : vector<32x1xf32>
    %65 = math.rsqrt %64 : vector<32x1xf32>
    %66 = vector.broadcast %65 : vector<32x1xf32> to vector<32x128xf32>
    %67 = arith.mulf %62, %66 : vector<32x128xf32>
    %c0_30 = arith.constant 0 : index
    %c0_31 = arith.constant 0 : index
    %68 = vector.load %arg4[%c0_30, %c0_31] : memref<1x128xf32, #tpu.memory_space<vmem>>, vector<1x128xf32>
    %69 = vector.broadcast %68 : vector<1x128xf32> to vector<32x128xf32>
    %70 = arith.mulf %67, %69 : vector<32x128xf32>
    %c0_32 = arith.constant 0 : index
    %c0_33 = arith.constant 0 : index
    %71 = vector.load %arg5[%c0_32, %c0_33] : memref<1x128xf32, #tpu.memory_space<vmem>>, vector<1x128xf32>
    %72 = vector.broadcast %71 : vector<1x128xf32> to vector<32x128xf32>
    %73 = arith.addf %70, %72 : vector<32x128xf32>
    %cst_34 = arith.constant 0.000000e+00 : f32
    %74 = vector.shape_cast %24 : vector<32x1xi1> to vector<32x1xi1>
    %75 = vector.broadcast %74 : vector<32x1xi1> to vector<32x128xi1>
    %76 = vector.broadcast %cst_34 : f32 to vector<32x128xf32>
    %77 = arith.select %75, %73, %76 : vector<32x128xi1>, vector<32x128xf32>
    %78 = arith.truncf %77 : vector<32x128xf32> to vector<32x128xbf16>
    %c0_35 = arith.constant 0 : index
    %c0_36 = arith.constant 0 : index
    %79 = vector.load %arg12[%c0_35, %c0_36] : memref<32x128xbf16, #tpu.memory_space<vmem>>, vector<32x128xbf16>
    tpu.vector_store %arg12[%c0_35, %c0_36], %78 {strides = array<i32>} : memref<32x128xbf16, #tpu.memory_space<vmem>>, vector<32x128xbf16>,
    %c0_37 = arith.constant 0 : index
    %c0_38 = arith.constant 0 : index
    %80 = vector.load %arg12[%c0_37, %c0_38] : memref<32x128xbf16, #tpu.memory_space<vmem>>, vector<32x128xbf16>
    %81 = vector.extract_strided_slice %80 {offsets = [31, 0], sizes = [1, 128], strides = [1, 1]} : vector<32x128xbf16> to vector<1x128xbf16>
    %82 = vector.extract_strided_slice %80 {offsets = [0, 0], sizes = [31, 128], strides = [1, 1]} : vector<32x128xbf16> to vector<31x128xbf16>
    %83 = tpu.concatenate %81, %82 in 0 : vector<1x128xbf16>, vector<31x128xbf16> -> vector<32x128xbf16>
    %c0_39 = arith.constant 0 : index
    %c0_40 = arith.constant 0 : index
    %c0_41 = arith.constant 0 : index
    %84 = vector.load %arg6[%c0_39, %c0_40, %c0_41] : memref<3x128x128xbf16, #tpu.memory_space<vmem>>, vector<1x128x128xbf16>
    %85 = vector.shape_cast %84 : vector<1x128x128xbf16> to vector<128x128xbf16>
    %cst_42 = arith.constant dense<0.000000e+00> : vector<32x128xf32>
    %86 = tpu.matmul %83, %85, %cst_42 {dimension_numbers = #tpu.dot_dimension_numbers<[1], [0], [0], [1], [0, 0, 1, 1], [], []>} : vector<32x128xbf16>, vector<128x128xbf16>, vector<32x128xf32> -> vector<32x128xf32>
    %c1_43 = arith.constant 1 : index
    %c0_44 = arith.constant 0 : index
    %c0_45 = arith.constant 0 : index
    %87 = vector.load %arg6[%c1_43, %c0_44, %c0_45] : memref<3x128x128xbf16, #tpu.memory_space<vmem>>, vector<1x128x128xbf16>
    %88 = vector.shape_cast %87 : vector<1x128x128xbf16> to vector<128x128xbf16>
    %cst_46 = arith.constant dense<0.000000e+00> : vector<32x128xf32>
    %89 = tpu.matmul %80, %88, %cst_46 {dimension_numbers = #tpu.dot_dimension_numbers<[1], [0], [0], [1], [0, 0, 1, 1], [], []>} : vector<32x128xbf16>, vector<128x128xbf16>, vector<32x128xf32> -> vector<32x128xf32>
    %90 = arith.addf %86, %89 : vector<32x128xf32>
    %91 = vector.extract_strided_slice %80 {offsets = [1, 0], sizes = [31, 128], strides = [1, 1]} : vector<32x128xbf16> to vector<31x128xbf16>
    %92 = vector.extract_strided_slice %80 {offsets = [0, 0], sizes = [1, 128], strides = [1, 1]} : vector<32x128xbf16> to vector<1x128xbf16>
    %93 = tpu.concatenate %91, %92 in 0 : vector<31x128xbf16>, vector<1x128xbf16> -> vector<32x128xbf16>
    %c2_47 = arith.constant 2 : index
    %c0_48 = arith.constant 0 : index
    %c0_49 = arith.constant 0 : index
    %94 = vector.load %arg6[%c2_47, %c0_48, %c0_49] : memref<3x128x128xbf16, #tpu.memory_space<vmem>>, vector<1x128x128xbf16>
    %95 = vector.shape_cast %94 : vector<1x128x128xbf16> to vector<128x128xbf16>
    %cst_50 = arith.constant dense<0.000000e+00> : vector<32x128xf32>
    %96 = tpu.matmul %93, %95, %cst_50 {dimension_numbers = #tpu.dot_dimension_numbers<[1], [0], [0], [1], [0, 0, 1, 1], [], []>} : vector<32x128xbf16>, vector<128x128xbf16>, vector<32x128xf32> -> vector<32x128xf32>
    %97 = arith.addf %90, %96 : vector<32x128xf32>
    %c0_51 = arith.constant 0 : index
    %c0_52 = arith.constant 0 : index
    %98 = vector.load %arg7[%c0_51, %c0_52] : memref<1x128xf32, #tpu.memory_space<vmem>>, vector<1x128xf32>
    %99 = vector.broadcast %98 : vector<1x128xf32> to vector<32x128xf32>
    %100 = arith.addf %97, %99 : vector<32x128xf32>
    %cst_53 = arith.constant 0.000000e+00 : f32
    %101 = vector.broadcast %cst_53 : f32 to vector<32x128xf32>
    %102 = arith.maximumf %100, %101 : vector<32x128xf32>
    %cst_54 = arith.constant dense<0.000000e+00> : vector<32xf32>
    %103 = vector.multi_reduction <add>, %102, %cst_54 [1] : vector<32x128xf32> to vector<32xf32>
    %104 = vector.shape_cast %103 : vector<32xf32> to vector<32x1xf32>
    %105 = arith.mulf %102, %102 : vector<32x128xf32>
    %cst_55 = arith.constant dense<0.000000e+00> : vector<32xf32>
    %106 = vector.multi_reduction <add>, %105, %cst_55 [1] : vector<32x128xf32> to vector<32xf32>
    %107 = vector.shape_cast %106 : vector<32xf32> to vector<32x1xf32>
    %cst_56 = arith.constant 1.250000e-01 : f32
    %108 = vector.broadcast %cst_56 : f32 to vector<32x1xf32>
    %109 = arith.mulf %104, %108 : vector<32x1xf32>
    %cst_57 = arith.constant 1.250000e-01 : f32
    %110 = vector.broadcast %cst_57 : f32 to vector<32x1xf32>
    %111 = arith.mulf %107, %110 : vector<32x1xf32>
    %112 = arith.mulf %109, %109 : vector<32x1xf32>
    %113 = arith.subf %111, %112 : vector<32x1xf32>
    %cst_58 = arith.constant 0.000000e+00 : f32
    %114 = vector.broadcast %cst_58 : f32 to vector<32x1xf32>
    %115 = arith.maximumf %113, %114 : vector<32x1xf32>
    %116 = vector.broadcast %109 : vector<32x1xf32> to vector<32x128xf32>
    %117 = arith.subf %102, %116 : vector<32x128xf32>
    %cst_59 = arith.constant 9.99999974E-6 : f32
    %118 = vector.broadcast %cst_59 : f32 to vector<32x1xf32>
    %119 = arith.addf %115, %118 : vector<32x1xf32>
    %120 = math.rsqrt %119 : vector<32x1xf32>
    %121 = vector.broadcast %120 : vector<32x1xf32> to vector<32x128xf32>
    %122 = arith.mulf %117, %121 : vector<32x128xf32>
    %c0_60 = arith.constant 0 : index
    %c0_61 = arith.constant 0 : index
    %123 = vector.load %arg8[%c0_60, %c0_61] : memref<1x128xf32, #tpu.memory_space<vmem>>, vector<1x128xf32>
    %124 = vector.broadcast %123 : vector<1x128xf32> to vector<32x128xf32>
    %125 = arith.mulf %122, %124 : vector<32x128xf32>
    %c0_62 = arith.constant 0 : index
    %c0_63 = arith.constant 0 : index
    %126 = vector.load %arg9[%c0_62, %c0_63] : memref<1x128xf32, #tpu.memory_space<vmem>>, vector<1x128xf32>
    %127 = vector.broadcast %126 : vector<1x128xf32> to vector<32x128xf32>
    %128 = arith.addf %125, %127 : vector<32x128xf32>
    %129 = vector.extract_strided_slice %128 {offsets = [0, 0], sizes = [16, 8], strides = [1, 1]} : vector<32x128xf32> to vector<16x8xf32>
    %c0_64 = arith.constant 0 : index
    %c0_65 = arith.constant 0 : index
    %c0_66 = arith.constant 0 : index
    %130 = vector.load %arg10[%c0_64, %c0_65, %c0_66] : memref<1x16x8xf32, #tpu.memory_space<vmem>>, vector<1x16x8xf32>
    %131 = vector.shape_cast %130 : vector<1x16x8xf32> to vector<16x8xf32>
    %132 = vector.shape_cast %129 : vector<16x8xf32> to vector<1x16x8xf32>
    tpu.vector_store %arg10[%c0_64, %c0_65, %c0_66], %132 {strides = array<i32>} : memref<1x16x8xf32, #tpu.memory_space<vmem>>, vector<1x16x8xf32>,
    return
  }
  func.func @transform_0(%arg0: i32) -> (i32, i32, i32) {
    %c0_i32 = arith.constant 0 : i32
    %c0_i32_0 = arith.constant 0 : i32
    %c0_i32_1 = arith.constant 0 : i32
    return %arg0, %c0_i32, %c0_i32_0 : i32, i32, i32
  }
  func.func @transform_1(%arg0: i32) -> (i32, i32, i32) {
    %c0_i32 = arith.constant 0 : i32
    %c0_i32_0 = arith.constant 0 : i32
    %c0_i32_1 = arith.constant 0 : i32
    %c0_i32_2 = arith.constant 0 : i32
    return %c0_i32, %c0_i32_0, %c0_i32_1 : i32, i32, i32
  }
  func.func @transform_2(%arg0: i32) -> (i32, i32) {
    %c0_i32 = arith.constant 0 : i32
    %c0_i32_0 = arith.constant 0 : i32
    %c0_i32_1 = arith.constant 0 : i32
    return %c0_i32, %c0_i32_0 : i32, i32
  }
  func.func @transform_3(%arg0: i32) -> (i32, i32) {
    %c0_i32 = arith.constant 0 : i32
    %c0_i32_0 = arith.constant 0 : i32
    %c0_i32_1 = arith.constant 0 : i32
    return %c0_i32, %c0_i32_0 : i32, i32
  }
  func.func @transform_4(%arg0: i32) -> (i32, i32) {
    %c0_i32 = arith.constant 0 : i32
    %c0_i32_0 = arith.constant 0 : i32
    %c0_i32_1 = arith.constant 0 : i32
    return %c0_i32, %c0_i32_0 : i32, i32
  }
  func.func @transform_5(%arg0: i32) -> (i32, i32, i32) {
    %c0_i32 = arith.constant 0 : i32
    %c0_i32_0 = arith.constant 0 : i32
    %c0_i32_1 = arith.constant 0 : i32
    %c0_i32_2 = arith.constant 0 : i32
    return %c0_i32, %c0_i32_0, %c0_i32_1 : i32, i32, i32
  }
  func.func @transform_6(%arg0: i32) -> (i32, i32) {
    %c0_i32 = arith.constant 0 : i32
    %c0_i32_0 = arith.constant 0 : i32
    %c0_i32_1 = arith.constant 0 : i32
    return %c0_i32, %c0_i32_0 : i32, i32
  }
  func.func @transform_7(%arg0: i32) -> (i32, i32) {
    %c0_i32 = arith.constant 0 : i32
    %c0_i32_0 = arith.constant 0 : i32
    %c0_i32_1 = arith.constant 0 : i32
    return %c0_i32, %c0_i32_0 : i32, i32
  }
  func.func @transform_8(%arg0: i32) -> (i32, i32) {
    %c0_i32 = arith.constant 0 : i32
    %c0_i32_0 = arith.constant 0 : i32
    %c0_i32_1 = arith.constant 0 : i32
    return %c0_i32, %c0_i32_0 : i32, i32
  }
  func.func @transform_9(%arg0: i32) -> (i32, i32, i32) {
    %c0_i32 = arith.constant 0 : i32
    %c0_i32_0 = arith.constant 0 : i32
    %c0_i32_1 = arith.constant 0 : i32
    return %arg0, %c0_i32, %c0_i32_0 : i32, i32, i32
  }
}

</mosaic_0001>

<bundles_post_ra>
// kernel: tpu_custom_call.1
= control target key start
LH: loop header
LB: loop body
LE: loop exit
PB: predicated region body
PF: predicated region fallthrough
CT: control target
= control target key end

     0   :  { %14 = vsyncpa [#allocation5], 0  ;;  %s2059_s0 = inlined_call_operand.vmem [shape: f32[2,16,4], index: 0, kind: input, shape index: {}]   ;;  %s2060_s1 = inlined_call_operand.hbm [shape: bf16[3,128,128], index: 1, kind: input, shape index: {}]   ;;  %s2061_s2 = inlined_call_operand.vmem [shape: f32[1,128], index: 2, kind: input, shape index: {}]   ;;  %s2062_s3 = inlined_call_operand.vmem [shape: f32[1,128], index: 3, kind: input, shape index: {}]   ;;  %s2063_s4 = inlined_call_operand.vmem [shape: f32[1,128], index: 4, kind: input, shape index: {}]   ;;  %s2064_s5 = inlined_call_operand.hbm [shape: bf16[3,128,128], index: 5, kind: input, shape index: {}]   ;;  %s2065_s6 = inlined_call_operand.vmem [shape: f32[1,128], index: 6, kind: input, shape index: {}]   ;;  %s2066_s7 = inlined_call_operand.vmem [shape: f32[1,128], index: 7, kind: input, shape index: {}]   ;;  %s2067_s8 = inlined_call_operand.vmem [shape: f32[1,128], index: 8, kind: input, shape index: {}]   ;;  %s2068_s9 = inlined_call_operand.vmem [shape: f32[2,16,8], index: 9, kind: output, shape index: {}]  }
   0x1   :  { %15 = vsyncpa [#allocation7], 0  ;;  %s1890_s30 = smov 0  }
   0x2 LB: > { %s1896_s10 = sadd.s32 4294967295, %s1832_s30   ;;  %p1424_p0 = scmp.ge.s32.totalorder %s1832_s30, 1  ;;  %s1832_s30 = sphi %s1890_s30, %s21_s30  }
   0x3   : > { %p246_p1 = scmp.lt.s32.totalorder %s1832_s30, 3  ;;  %s1834_s11 = smov [#allocation4]  }
   0x4   : > { %s258_s12 = sshll.u32 %s1834_s11, 4  ;;  %p2069_p3 = scmp.eq.s32.totalorder %s1896_s10, 0  ;;  %s259_s12 = int_to_ptr.vmem [resolvable:$true] %s258_s12 }
   0x5   : > { %p1900_p2 = pnand %p1424_p0, %p246_p1  ;;  %s1835_s14 = smov [#allocation6]  }
   0x6   : > { %s280_s15 = sshll.u32 %s1835_s14, 4  ;;  %s1762_s19 = scalar_lea.hbm %s2060_s1, 3072  ;;  %s1913_s15 = int_to_ptr.vmem [resolvable:$true] %s280_s15 }
   0x7   : > { %s2071_s13 = scalar_select %p1900_p2, 1, 0 }
   0x8   : > { %p1681_p4 = pneg %p1900_p2  ;;  %p1763_p6 = scmp.ne.s32.totalorder %s2060_s1, %s1762_s19 }
   0x9   : > { %p1769_p10 = scmp.lt.u32.totalorder %s1762_s19, %s2060_s1 }
   0xa   : > { %p1909_p5 = pnand %p2069_p3, %p1681_p4 }
   0xc   : > { %p1764_p7 = pneg %p1909_p5 }
   0xe   : > { %p1765_p8 = pnand %p1764_p7, %p1763_p6 }
  0x10   : > { %p1766_p9 = pneg %p1765_p8 }
  0x12   : > { %p1771_p11 = pnand %p1769_p10, %p1766_p9 }
  0x14   : > { %1774 = shalt.err (!%p1771_p11)
}
  0x15   : > { %s1775_s24 = scalar_lea.vmem %s259_s12, 3072  ;;  %p1783_p1 = scmp.lt.s32.totalorder %s259_s12, %s259_s12 }
  0x16   : > { %p1776_p12 = scmp.ne.s32.totalorder %s259_s12, %s1775_s24  ;;  %p1784_p4 = scmp.lt.s32.totalorder %s1775_s24, %s1775_s24 }
  0x18   : > { %p1778_p13 = pnand %p1776_p12, %p1764_p7  ;;  %p1785_p3 = por %p1784_p4, %p1783_p1 }
  0x1a   : > { %p1779_p0 = pneg %p1778_p13 }
  0x1c   : > { %p1786_p2 = pnand %p1785_p3, %p1779_p0 }
  0x1e   : > { %1789 = shalt.err (!%p1786_p2)
}
  0x1f   : > { %s1836_s25 = smov 64   ;;  %s1837_s26 = smov 4  }
  0x20   : > { %1684 = dma.hbm_to_vmem [thread:$0]  (!%p1909_p5), %s2060_s1, 3072, %s259_s12, [#allocation5], %s1836_s25, %s1836_s25, %s1837_s26  }
  0x21   : > { %s1790_s14 = scalar_lea.hbm %s2064_s5, 3072 }
  0x22   : > { %p1791_p6 = scmp.ne.s32.totalorder %s2064_s5, %s1790_s14  ;;  %p1797_p8 = scmp.lt.u32.totalorder %s1790_s14, %s2064_s5 }
  0x24   : > { %p1793_p2 = pnand %p1791_p6, %p1764_p7 }
  0x26   : > { %p1794_p3 = pneg %p1793_p2 }
  0x28   : > { %p1799_p9 = pnand %p1797_p8, %p1794_p3 }
  0x2a   : > { %1802 = shalt.err (!%p1799_p9)
}
  0x2b   : > { %s1803_s12 = scalar_lea.vmem %s1913_s15, 3072  ;;  %p1811_p13 = scmp.lt.s32.totalorder %s1913_s15, %s1913_s15 }
  0x2c   : > { %p1804_p10 = scmp.ne.s32.totalorder %s1913_s15, %s1803_s12  ;;  %p1812_p0 = scmp.lt.s32.totalorder %s1803_s12, %s1803_s12 }
  0x2e   : > { %p1806_p11 = pnand %p1804_p10, %p1764_p7  ;;  %p1813_p1 = por %p1812_p0, %p1811_p13 }
  0x30   : > { %p1807_p12 = pneg %p1806_p11 }
  0x32   : > { %p1814_p4 = pnand %p1813_p1, %p1807_p12 }
  0x34   : > { %1817 = shalt.err (!%p1814_p4)
}
  0x35   : > { %1687 = dma.hbm_to_vmem [thread:$0]  (!%p1909_p5), %s2064_s5, 3072, %s1913_s15, [#allocation7], %s1836_s25, %s1836_s25, %s1837_s26  }
  0x36   : > { %p2073_p6 = scmp.ne.s32.totalorder %s2071_s13, 0 }
  0x37   : > { %p2074_p2 = scmp.eq.s32.totalorder (!%p2073_p6), %s1896_s10, 0 }
  0x38   : > { %313 = sbr.rel (%p2073_p6) target bundleno = 952 (0x3b8), region = 56 }
  0x3f   : > { %1823 = dma.done.wait (%p2074_p2), [#allocation5], 3072   ;;  %p2075_p7 = pmov %p2074_p2 }
  0x40   : > { %p2076_p3 = pmov %p2074_p2 }
  0x41   : > { %1825 = vsyncadd (%p2075_p7), [#allocation5], 4294964224 }
  0x42   : > { %1827 = dma.done.wait (%p2076_p3), [#allocation7], 3072   ;;  %p2077_p8 = pmov %p2074_p2 }
  0x43   : > { %v1838_v0 = vmov 0   ;;  %v1706_v1 = vld [vmem:[#allocation4 + $0x40] sm:$0xff]   ;;  %v1708_v3 = vld [vmem:[#allocation4 + $0x48] sm:$0xff]   ;;  %p353_p5 = scmp.lt.s32.totalorder %s1896_s10, 1  ;;  %v1710_v5 = vld [vmem:[#allocation4 + $0x50] sm:$0xff]   ;;  %vm369_vm0 = vcmask 31744  }
  0x44   : > { %1829 = vsyncadd (%p2077_p8), [#allocation7], 4294964224  ;;  %364 = vst [vmem:[#allocation2] sm:$0xff] %v1838_v0  ;;  %v1707_v2 = vld [vmem:[#allocation4] sm:$0xff]   ;;  %1553 = vmatprep.subr.bf16.mxu0 %v1706_v1  ;;  %v1709_v4 = vld [vmem:[#allocation4 + $0x8] sm:$0xff]   ;;  %vm449_vm2 = vcmask 1040384  }
  0x45   : > { %1573 = vmatprep.subr.bf16.mxu1 %v1707_v2  ;;  %1554 = vmatpush3.bf16.msra.mxu0 %v1706_v1  ;;  %v1711_v6 = vld [vmem:[#allocation4 + $0x10] sm:$0xff]   ;;  %s2083_s10 = smov (!%p353_p5, %s1896_s10), 1  ;;  %v1712_v7 = vld [vmem:[#allocation4 + $0x58] sm:$0xff]   ;;  %v1714_v9 = vld [vmem:[#allocation4 + $0x60] sm:$0xff]   ;;  %vm435_vm1 = vsmask.f32 256 }
  0x46   : > { %1574 = vmatpush3.bf16.msra.mxu1 %v1707_v2  ;;  %1555 = vmatprep.subr.bf16.mxu0 %v1708_v3  ;;  %v1713_v8 = vld [vmem:[#allocation4 + $0x18] sm:$0xff]   ;;  %s1491_s13 = sshll.u32 %s2083_s10, 4  ;;  %v1715_v10 = vld [vmem:[#allocation4 + $0x20] sm:$0xff]   ;;  %v1716_v11 = vld [vmem:[#allocation4 + $0x68] sm:$0xff]   ;;  %vm679_vm3 = vsmask.f32 7424 }
  0x47   : > { %1575 = vmatprep.subr.bf16.mxu1 %v1709_v4  ;;  %s357_s23 = scalar_lea.vmem %s2059_s0, %s1491_s13  ;;  %v1717_v14 = vld [vmem:[#allocation4 + $0x28] sm:$0xff]   ;;  %v1718_v16 = vld [vmem:[#allocation4 + $0x70] sm:$0xff]   ;;  %v1720_v18 = vld [vmem:[#allocation4 + $0x78] sm:$0xff]   ;;  %v1984_v20 = vrot.slane %v1838_v0, 7  ;;  %v1987_v23 = vrot.slane %v1838_v0, 1  ;;  %vm688_vm5 = vcmask 1047552   ;;  %s362_s22 = scalar_lea.vmem %s2068_s9, %s1491_s13 }
  0x48   : > { %v366_v12 = vld [vmem:[%s357_s23] sm:$0xff]  ;;  %v367_v13 = vld [vmem:[%s357_s23 + $0x8] sm:$0xff]  ;;  %v1722_v22 = vld [vmem:[#allocation4 + $0x80] sm:$0xff]   ;;  %vm1342_vm7 = vcmask 64512  }
  0x49   : > { %1556 = vmatpush3.bf16.msra.mxu0 %v1708_v3  ;;  %v368_v15 = vpack.c.bf16 %v367_v13, %v366_v12  ;;  %v1719_v17 = vld [vmem:[#allocation4 + $0x30] sm:$0xff]   ;;  %v1721_v19 = vld [vmem:[#allocation4 + $0x38] sm:$0xff]   ;;  %vm1991_vm4 = vmand %vm449_vm2, %vm435_vm1 }
  0x4a   : > { %1576 = vmatpush3.bf16.msra.mxu1 %v1709_v4  ;;  %1557 = vmatprep.subr.bf16.mxu0 %v1710_v5  ;;  %v1723_v29 = vld [vmem:[#allocation4 + $0x88] sm:$0xff]   ;;  %v1724_v35 = vld [vmem:[#allocation4 + $0x90] sm:$0xff]   ;;  %v1725_v36 = vld [vmem:[#allocation4 + $0x98] sm:$0xff]  }
  0x4b   : > { %1577 = vmatprep.subr.bf16.mxu1 %v1711_v6  ;;  %370 = vst.msk [vmem:[#allocation2] sm:$0xff] %vm369_vm0, %v368_v15  ;;  %v1726_v37 = vld [vmem:[#allocation4 + $0xa0] sm:$0xff]   ;;  %v1727_v38 = vld [vmem:[#allocation4 + $0xa8] sm:$0xff]   ;;  %v1728_v39 = vld [vmem:[#allocation4 + $0xb0] sm:$0xff]  }
  0x4c   : > { %v1729_v40 = vld [vmem:[#allocation4 + $0xb8] sm:$0xff]   ;;  %vm2004_vm6 = vmand %vm688_vm5, %vm679_vm3  ;;  %v1459_v55 = vld [vmem:[%s2061_s2] ss:$0 sm:$0xff] }
  0x4d   : > { %1558 = vmatpush3.bf16.msra.mxu0 %v1710_v5  ;;  %v1730_v2 = vld [vmem:[#allocation6 + $0x40] sm:$0xff]   ;;  %v1731_v3 = vld [vmem:[#allocation6 + $0x48] sm:$0xff]   ;;  %v1732_v4 = vld [vmem:[#allocation6 + $0x50] sm:$0xff]  }
  0x4e   : > { %1578 = vmatpush3.bf16.msra.mxu1 %v1711_v6  ;;  %1559 = vmatprep.subr.bf16.mxu0 %v1712_v7  ;;  %v1733_v5 = vld [vmem:[#allocation6] sm:$0xff]   ;;  %v1734_v6 = vld [vmem:[#allocation6 + $0x58] sm:$0xff]   ;;  %v1740_v12 = vld [vmem:[#allocation6 + $0x70] sm:$0xff]  }
  0x4f   : > { %1579 = vmatprep.subr.bf16.mxu1 %v1713_v8  ;;  %v1741_v13 = vld [vmem:[#allocation6 + $0x20] sm:$0xff]   ;;  %v1743_v15 = vld [vmem:[#allocation6 + $0x28] sm:$0xff]   ;;  %v1752_v28 = vld [vmem:[#allocation6 + $0xb0] sm:$0xff]  }
  0x51   : > { %1560 = vmatpush3.bf16.msra.mxu0 %v1712_v7  ;;  %v1735_v7 = vld [vmem:[#allocation6 + $0x8] sm:$0xff]  }
  0x52   : > { %1580 = vmatpush3.bf16.msra.mxu1 %v1713_v8  ;;  %1561 = vmatprep.subr.bf16.mxu0 %v1714_v9  ;;  %v428_v21 = vld [vmem:[#allocation2] sm:$0xff]  ;;  %v1736_v8 = vld [vmem:[#allocation6 + $0x60] sm:$0xff]  }
  0x53   : > { %1581 = vmatprep.subr.bf16.mxu1 %v1715_v10  ;;  %v437_v24 = vshrl.u32 %v428_v21, 16  ;;  %v440_v25 = vshll.u32 %v428_v21, 16  ;;  %1569 = vmatprep.mubr.bf16.mxu0 %v428_v21 }
  0x55   : > { %1562 = vmatpush3.bf16.msra.mxu0 %v1714_v9  ;;  %v439_v26 = vrot.slane %v437_v24, 7  ;;  %v680_v27 = vrot.slane %v440_v25, 1  ;;  %v1737_v9 = vld [vmem:[#allocation6 + $0x10] sm:$0xff]  }
  0x56   : > { %1582 = vmatpush3.bf16.msra.mxu1 %v1715_v10  ;;  %1563 = vmatprep.subr.bf16.mxu0 %v1716_v11  ;;  %v1738_v10 = vld [vmem:[#allocation6 + $0x68] sm:$0xff]  }
  0x57   : > { %1583 = vmatprep.subr.bf16.mxu1 %v1717_v14  ;;  %v681_v30 = vor.u32 %v680_v27, %v437_v24  ;;  %v442_v31 = vor.u32 %v440_v25, %v439_v26  ;;  %v446_v32 = vsel %vm435_vm1, %v439_v26, %v1984_v20  ;;  %v690_v42 = vsel %vm2004_vm6, %v1987_v23, %v680_v27 }
  0x59   : > { %1564 = vmatpush3.bf16.msra.mxu0 %v1716_v11  ;;  %v451_v33 = vsel %vm1991_vm4, %v1984_v20, %v442_v31  ;;  %v683_v34 = vsel %vm679_vm3, %v681_v30, %v1987_v23  ;;  %v1739_v11 = vld [vmem:[#allocation6 + $0x18] sm:$0xff]  }
  0x5a   : > { %1584 = vmatpush3.bf16.msra.mxu1 %v1717_v14  ;;  %1565 = vmatprep.subr.bf16.mxu0 %v1718_v16  ;;  %v1742_v14 = vld [vmem:[#allocation6 + $0x78] sm:$0xff]  }
  0x5b   : > { %1585 = vmatprep.subr.bf16.mxu1 %v1719_v17  ;;  %1589 = vmatprep.mubr.bf16.mxu1 %v451_v33 }
  0x5d   : > { %1566 = vmatpush3.bf16.msra.mxu0 %v1718_v16  ;;  %v1744_v16 = vld [vmem:[#allocation6 + $0x30] sm:$0xff]  }
  0x5e   : > { %1586 = vmatpush3.bf16.msra.mxu1 %v1719_v17  ;;  %1567 = vmatprep.subr.bf16.mxu0 %v1720_v18  ;;  %v1745_v17 = vld [vmem:[#allocation6 + $0x80] sm:$0xff]  }
  0x5f   : > { %1587 = vmatprep.subr.bf16.mxu1 %v1721_v19 }
  0x61   : > { %1568 = vmatpush3.bf16.msra.mxu0 %v1720_v18  ;;  %v1746_v18 = vld [vmem:[#allocation6 + $0x38] sm:$0xff]  }
  0x62   : > { %1588 = vmatpush3.bf16.msra.mxu1 %v1721_v19  ;;  %1593 = vmatprep.subr.bf16.mxu0 %v1722_v22 }
  0x63   : > { %1613 = vmatprep.subr.bf16.mxu1 %v1730_v2 }
  0x64   : > { %1570 = vmatmul.mubr.bf16.vlgmr.msra.gmra.mrb[0].mxu0 %v1838_v0 }
  0x65   : > { %1590 = vmatmul.mubr.bf16.vlgmr.msra.gmra.mrb[0].mxu1 %v446_v32  ;;  %1594 = vmatpush3.bf16.msra.mxu0 %v1722_v22 }
  0x66   : > { %1595 = vmatprep.subr.bf16.mxu0 %v1723_v29  ;;  %1609 = vmatprep.mubr.bf16.mxu0 %v683_v34 }
  0x67   : > { %1614 = vmatpush3.bf16.msra.mxu1 %v1730_v2  ;;  %v1751_v2 = vld [vmem:[#allocation6 + $0xa8] sm:$0xff]  }
  0x68   : > { %1615 = vmatprep.subr.bf16.mxu1 %v1731_v3 }
  0x69   : > { %1596 = vmatpush3.bf16.msra.mxu0 %v1723_v29 }
  0x6a   : > { %1597 = vmatprep.subr.bf16.mxu0 %v1724_v35 }
  0x6b   : > { %1616 = vmatpush3.bf16.msra.mxu1 %v1731_v3  ;;  %v1753_v3 = vld [vmem:[#allocation6 + $0xb8] sm:$0xff]  }
  0x6c   : > { %1617 = vmatprep.subr.bf16.mxu1 %v1732_v4 }
  0x6d   : > { %1598 = vmatpush3.bf16.msra.mxu0 %v1724_v35 }
  0x6e   : > { %1599 = vmatprep.subr.bf16.mxu0 %v1725_v36 }
  0x6f   : > { %1618 = vmatpush3.bf16.msra.mxu1 %v1732_v4 }
  0x70   : > { %1619 = vmatprep.subr.bf16.mxu1 %v1734_v6 }
  0x71   : > { %1600 = vmatpush3.bf16.msra.mxu0 %v1725_v36 }
  0x72   : > { %1601 = vmatprep.subr.bf16.mxu0 %v1726_v37 }
  0x73   : > { %1620 = vmatpush3.bf16.msra.mxu1 %v1734_v6 }
  0x74   : > { %1621 = vmatprep.subr.bf16.mxu1 %v1736_v8 }
  0x75   : > { %1602 = vmatpush3.bf16.msra.mxu0 %v1726_v37 }
  0x76   : > { %1603 = vmatprep.subr.bf16.mxu0 %v1727_v38 }
  0x77   : > { %1622 = vmatpush3.bf16.msra.mxu1 %v1736_v8 }
  0x78   : > { %1623 = vmatprep.subr.bf16.mxu1 %v1738_v10 }
  0x79   : > { %1604 = vmatpush3.bf16.msra.mxu0 %v1727_v38 }
  0x7a   : > { %1605 = vmatprep.subr.bf16.mxu0 %v1728_v39 }
  0x7b   : > { %1624 = vmatpush3.bf16.msra.mxu1 %v1738_v10 }
  0x7c   : > { %1625 = vmatprep.subr.bf16.mxu1 %v1740_v12 }
  0x7d   : > { %1606 = vmatpush3.bf16.msra.mxu0 %v1728_v39 }
  0x7e   : > { %1607 = vmatprep.subr.bf16.mxu0 %v1729_v40 }
  0x7f   : > { %1626 = vmatpush3.bf16.msra.mxu1 %v1740_v12 }
  0x80   : > { %1627 = vmatprep.subr.bf16.mxu1 %v1742_v14 }
  0x81   : > { %1608 = vmatpush3.bf16.msra.mxu0 %v1729_v40 }
  0x82   : > { %1633 = vmatprep.subr.bf16.mxu0 %v1733_v5 }
  0x83   : > { %1628 = vmatpush3.bf16.msra.mxu1 %v1742_v14 }
  0x84   : > { %1610 = vmatmul.mubr.bf16.vlgmr.msra.gmra.mrb[4].mxu0 %v690_v42  ;;  %1653 = vmatprep.subr.bf16.mxu1 %v1745_v17  ;;  %v1460_v42 = vld [vmem:[%s2062_s3] ss:$0 sm:$0xff] }
  0x85   : > { %1634 = vmatpush3.bf16.msra.mxu0 %v1733_v5 }
  0x86   : > { %1635 = vmatprep.subr.bf16.mxu0 %v1735_v7 }
  0x89   : > { %1636 = vmatpush3.bf16.msra.mxu0 %v1735_v7 }
  0x8a   : > { %1637 = vmatprep.subr.bf16.mxu0 %v1737_v9 }
  0x8d   : > { %1638 = vmatpush3.bf16.msra.mxu0 %v1737_v9 }
  0x8e   : > { %1639 = vmatprep.subr.bf16.mxu0 %v1739_v11 }
  0x91   : > { %1640 = vmatpush3.bf16.msra.mxu0 %v1739_v11 }
  0x92   : > { %1641 = vmatprep.subr.bf16.mxu0 %v1741_v13 }
  0x95   : > { %1642 = vmatpush3.bf16.msra.mxu0 %v1741_v13 }
  0x96   : > { %1643 = vmatprep.subr.bf16.mxu0 %v1743_v15 }
  0x99   : > { %1644 = vmatpush3.bf16.msra.mxu0 %v1743_v15 }
  0x9a   : > { %1645 = vmatprep.subr.bf16.mxu0 %v1744_v16 }
  0x9d   : > { %1646 = vmatpush3.bf16.msra.mxu0 %v1744_v16  ;;  %v1486_v16 = vld [vmem:[%s2065_s6] ss:$0 sm:$0xff] }
  0x9e   : > { %1647 = vmatprep.subr.bf16.mxu0 %v1746_v18 }
  0xa1   : > { %1648 = vmatpush3.bf16.msra.mxu0 %v1746_v18 }
 0x137   : > { %v1571_v43 = vpop.f32.mrb[0].mxu0 }
 0x138   : > { %v1591_v44 = vpop.f32.mrb[0].mxu1  ;;  %v567_v45 = vpop.f32.mrb[1].mxu0 }
 0x139   : > { %v664_v46 = vpop.f32.mrb[1].mxu1  ;;  %v1572_v47 = vpop.f32.mrb[2].mxu0 }
 0x13a   : > { %v665_v48 = vadd.f32 %v664_v46, %v567_v45  ;;  %v1592_v49 = vpop.f32.mrb[2].mxu1  ;;  %v570_v50 = vpop.f32.mrb[3].mxu0  ;;  %v1461_v47 = vld [vmem:[%s2063_s4] ss:$0 sm:$0xff] }
 0x13b   : > { %v667_v51 = vpop.f32.mrb[3].mxu1 }
 0x13c   : > { %v668_v52 = vadd.f32 %v667_v51, %v570_v50 }
 0x157   : > { %v1611_v53 = vpop.f32.mrb[4].mxu0 }
 0x158   : > { %v790_v54 = vpop.f32.mrb[5].mxu0 }
 0x159   : > { %v805_v56 = vadd.f32 %v790_v54, %v665_v48  ;;  %v1612_v57 = vpop.f32.mrb[6].mxu0 }
 0x15a   : > { %v793_v58 = vpop.f32.mrb[7].mxu0 }
 0x15b   : > { %v816_v59 = vadd.f32 %v1459_v55, %v805_v56  ;;  %v806_v60 = vadd.f32 %v793_v58, %v668_v52  ;;  %v1747_v52 = vld [vmem:[#allocation6 + $0x88] sm:$0xff]  }
 0x15d   : > { %v2014_v61 = vmax.f32 %v816_v59, 0.0  ;;  %v817_v62 = vadd.f32 %v1459_v55, %v806_v60  ;;  %v1839_v55 = vmov 0.0|0.0   ;;  %v1748_v60 = vld [vmem:[#allocation6 + $0x90] sm:$0xff]  }
 0x15f   : > { %v2016_v63 = vmax.f32 %v817_v62, 0.0  ;;  %824 = vadd.xlane.f32.xlu0 %v2014_v61  ;;  %v832_v0 = vmul.f32 %v2014_v61, %v2014_v61 }
 0x161   : > { %836 = vadd.xlane.f32.xlu1 %v832_v0  ;;  %v833_v1 = vmul.f32 %v2016_v63, %v2016_v63  ;;  %v1749_v0 = vld [vmem:[#allocation6 + $0x98] sm:$0xff]  }
 0x163   : > { %826 = vadd.xlane.f32.xlu0 %v2016_v63 }
 0x165   : > { %838 = vadd.xlane.f32.xlu1 %v833_v1  ;;  %v1750_v1 = vld [vmem:[#allocation6 + $0xa0] sm:$0xff]  }
 0x1ec   : > { %v825_v19 = vpop.xlane.xlu0 %824 }
 0x1ed   : > { %v844_v21 = vmul.f32 0.125, %v825_v19 }
 0x1ee   : > { %v837_v22 = vpop.xlane.xlu1 %836 }
 0x1ef   : > { %v852_v24 = vmul.f32 %v844_v21, %v844_v21  ;;  %v848_v25 = vmul.f32 0.125, %v837_v22  ;;  %v864_v38 = vsub.f32 %v2014_v61, %v844_v21 }
 0x1f0   : > { %v827_v26 = vpop.xlane.xlu0 %826 }
 0x1f1   : > { %v856_v27 = vsub.f32 %v848_v25, %v852_v24  ;;  %v845_v29 = vmul.f32 0.125, %v827_v26 }
 0x1f2   : > { %v839_v30 = vpop.xlane.xlu1 %838 }
 0x1f3   : > { %v860_v31 = vmax.f32 %v856_v27, 0.0  ;;  %v853_v32 = vmul.f32 %v845_v29, %v845_v29  ;;  %v849_v33 = vmul.f32 0.125, %v839_v30  ;;  %v865_v43 = vsub.f32 %v2016_v63, %v845_v29 }
 0x1f5   : > { %v868_v34 = vadd.f32 1e-05, %v860_v31  ;;  %v857_v35 = vsub.f32 %v849_v33, %v853_v32 }
 0x1f7   : > { %1754 = vrsqrt.f32 %v868_v34  ;;  %v861_v36 = vmax.f32 %v857_v35, 0.0 }
 0x1f9   : > { %v869_v37 = vadd.f32 1e-05, %v861_v36 }
 0x1fb   : > { %1756 = vrsqrt.f32 %v869_v37 }
 0x201   : > { %v1755_v39 = vpop.eup %1754 }
 0x202   : > { %v876_v40 = vmul.f32 %v1755_v39, %v864_v38 }
 0x204   : > { %v887_v46 = vmul.f32 %v1460_v42, %v876_v40 }
 0x205   : > { %v1757_v44 = vpop.eup %1756 }
 0x206   : > { %v877_v45 = vmul.f32 %v1757_v44, %v865_v43  ;;  %v898_v49 = vadd.f32 %v1461_v47, %v887_v46 }
 0x208   : > { %v888_v48 = vmul.f32 %v1460_v42, %v877_v45 }
 0x20a   : > { %v899_v50 = vadd.f32 %v1461_v47, %v888_v48  ;;  %v1487_v47 = vld [vmem:[%s2066_s7] ss:$0 sm:$0xff] }
 0x20c   : > { %v914_v51 = vpack.c.bf16 %v899_v50, %v898_v49 }
 0x20e   : > { %v926_v53 = vshrl.u32 %v914_v51, 16  ;;  %1629 = vmatprep.mubr.bf16.mxu1 %v914_v51  ;;  %v929_v54 = vshll.u32 %v914_v51, 16  ;;  %v1488_v51 = vld [vmem:[%s2067_s8] ss:$0 sm:$0xff] }
 0x20f   : > { %1630 = vmatmul.mubr.bf16.vlgmr.msra.gmra.mrb[4].mxu1 %v1839_v55 }
 0x210   : > { %1654 = vmatpush3.bf16.msra.mxu1 %v1745_v17  ;;  %v928_v56 = vrot.slane %v926_v53, 7  ;;  %v1162_v57 = vrot.slane %v929_v54, 1 }
 0x211   : > { %1655 = vmatprep.subr.bf16.mxu1 %v1747_v52 }
 0x212   : > { %v931_v58 = vor.u32 %v929_v54, %v928_v56  ;;  %v1163_v59 = vor.u32 %v1162_v57, %v926_v53  ;;  %v935_v63 = vsel %vm435_vm1, %v928_v56, %v1984_v20 }
 0x214   : > { %1656 = vmatpush3.bf16.msra.mxu1 %v1747_v52  ;;  %v938_v61 = vsel %vm1991_vm4, %v1984_v20, %v931_v58  ;;  %v1165_v62 = vsel %vm679_vm3, %v1163_v59, %v1987_v23  ;;  %v1170_v20 = vsel %vm2004_vm6, %v1987_v23, %v1162_v57 }
 0x215   : > { %1649 = vmatprep.mubr.bf16.mxu0 %v938_v61  ;;  %1669 = vmatprep.mubr.bf16.mxu1 %v1165_v62 }
 0x216   : > { %1650 = vmatmul.mubr.bf16.vlgmr.msra.gmra.mrb[8].mxu0 %v935_v63  ;;  %1657 = vmatprep.subr.bf16.mxu1 %v1748_v60 }
 0x218   : > { %1658 = vmatpush3.bf16.msra.mxu1 %v1748_v60 }
 0x219   : > { %1659 = vmatprep.subr.bf16.mxu1 %v1749_v0 }
 0x21c   : > { %1660 = vmatpush3.bf16.msra.mxu1 %v1749_v0 }
 0x21d   : > { %1661 = vmatprep.subr.bf16.mxu1 %v1750_v1 }
 0x220   : > { %1662 = vmatpush3.bf16.msra.mxu1 %v1750_v1 }
 0x221   : > { %1663 = vmatprep.subr.bf16.mxu1 %v1751_v2 }
 0x224   : > { %1664 = vmatpush3.bf16.msra.mxu1 %v1751_v2 }
 0x225   : > { %1665 = vmatprep.subr.bf16.mxu1 %v1752_v28 }
 0x228   : > { %1666 = vmatpush3.bf16.msra.mxu1 %v1752_v28 }
 0x229   : > { %1667 = vmatprep.subr.bf16.mxu1 %v1753_v3 }
 0x22c   : > { %1668 = vmatpush3.bf16.msra.mxu1 %v1753_v3 }
 0x22f   : > { %1670 = vmatmul.mubr.bf16.vlgmr.msra.gmra.mrb[8].mxu1 %v1170_v20 }
 0x2e2   : > { %v1631_v4 = vpop.f32.mrb[4].mxu1 }
 0x2e3   : > { %v1054_v5 = vpop.f32.mrb[5].mxu1 }
 0x2e4   : > { %v1632_v6 = vpop.f32.mrb[6].mxu1 }
 0x2e5   : > { %v1057_v7 = vpop.f32.mrb[7].mxu1 }
 0x2e9   : > { %v1651_v8 = vpop.f32.mrb[8].mxu0 }
 0x2ea   : > { %v1149_v9 = vpop.f32.mrb[9].mxu0 }
 0x2eb   : > { %v1150_v10 = vadd.f32 %v1149_v9, %v1054_v5  ;;  %v1652_v11 = vpop.f32.mrb[10].mxu0 }
 0x2ec   : > { %v1152_v12 = vpop.f32.mrb[11].mxu0 }
 0x2ed   : > { %v1153_v13 = vadd.f32 %v1152_v12, %v1057_v7 }
 0x302   : > { %v1671_v14 = vpop.f32.mrb[8].mxu1 }
 0x303   : > { %v1270_v15 = vpop.f32.mrb[9].mxu1 }
 0x304   : > { %v1283_v17 = vadd.f32 %v1270_v15, %v1150_v10  ;;  %v1672_v41 = vpop.f32.mrb[10].mxu1 }
 0x305   : > { %v1273_v23 = vpop.f32.mrb[11].mxu1 }
 0x306   : > { %v1292_v18 = vadd.f32 %v1486_v16, %v1283_v17  ;;  %v1284_v19 = vadd.f32 %v1273_v23, %v1153_v13 }
 0x308   : > { %v1294_v21 = vmax.f32 %v1292_v18, 0.0  ;;  %v1293_v22 = vadd.f32 %v1486_v16, %v1284_v19 }
 0x30a   : > { %v1295_v24 = vmax.f32 %v1293_v22, 0.0  ;;  %1296 = vadd.xlane.f32.xlu0 %v1294_v21  ;;  %v1300_v25 = vmul.f32 %v1294_v21, %v1294_v21 }
 0x30c   : > { %1298 = vadd.xlane.f32.xlu1 %v1295_v24  ;;  %v1301_v26 = vmul.f32 %v1295_v24, %v1295_v24 }
 0x30e   : > { %1302 = vadd.xlane.f32.xlu0 %v1300_v25 }
 0x310   : > { %1304 = vadd.xlane.f32.xlu1 %v1301_v26 }
 0x397   : > { %v1297_v27 = vpop.xlane.xlu0 %1296 }
 0x398   : > { %v1306_v29 = vmul.f32 0.125, %v1297_v27 }
 0x399   : > { %v1299_v30 = vpop.xlane.xlu1 %1298 }
 0x39a   : > { %v1307_v31 = vmul.f32 0.125, %v1299_v30  ;;  %v1310_v33 = vmul.f32 %v1306_v29, %v1306_v29  ;;  %v1316_v45 = vsub.f32 %v1294_v21, %v1306_v29 }
 0x39b   : > { %v1303_v32 = vpop.xlane.xlu0 %1302 }
 0x39c   : > { %v1308_v34 = vmul.f32 0.125, %v1303_v32  ;;  %v1311_v36 = vmul.f32 %v1307_v31, %v1307_v31  ;;  %v1317_v48 = vsub.f32 %v1295_v24, %v1307_v31 }
 0x39d   : > { %v1305_v35 = vpop.xlane.xlu1 %1304 }
 0x39e   : > { %v1312_v37 = vsub.f32 %v1308_v34, %v1310_v33  ;;  %v1309_v38 = vmul.f32 0.125, %v1305_v35 }
 0x3a0   : > { %v1314_v39 = vmax.f32 %v1312_v37, 0.0  ;;  %v1313_v40 = vsub.f32 %v1309_v38, %v1311_v36 }
 0x3a2   : > { %v1318_v42 = vadd.f32 1e-05, %v1314_v39  ;;  %v1315_v43 = vmax.f32 %v1313_v40, 0.0 }
 0x3a4   : > { %1758 = vrsqrt.f32 %v1318_v42  ;;  %v1319_v44 = vadd.f32 1e-05, %v1315_v43 }
 0x3a6   : > { %1760 = vrsqrt.f32 %v1319_v44 }
 0x3ae   : > { %v1759_v46 = vpop.eup %1758 }
 0x3af   : > { %v1322_v49 = vmul.f32 %v1759_v46, %v1316_v45 }
 0x3b0   : > { %v1761_v50 = vpop.eup %1760 }
 0x3b1   : > { %v1331_v52 = vmul.f32 %v1487_v47, %v1322_v49  ;;  %v1323_v53 = vmul.f32 %v1761_v50, %v1317_v48 }
 0x3b3   : > { %v1340_v54 = vadd.f32 %v1488_v51, %v1331_v52  ;;  %v1332_v55 = vmul.f32 %v1487_v47, %v1323_v53 }
 0x3b5   : > { %1343 = vst.msk [vmem:[%s362_s22] sm:$0xff] %vm1342_vm7, %v1340_v54  ;;  %v1341_v56 = vadd.f32 %v1488_v51, %v1332_v55 }
 0x3b7   : > { %1344 = vst.msk [vmem:[%s362_s22 + $0x8] sm:$0xff] %vm1342_vm7, %v1341_v56 }
 0x3b8 PF: > { %s21_s30 = sadd.s32 1, %s1832_s30  }
 0x3b9   : > { %p18_p9 = scmp.ge.s32.totalorder %s21_s30, 4  }
 0x3bb   :  { %20 = sbr.rel (!%p18_p9) target bundleno = 2 (0x2), region = 99 }
 0x3c2   :  { %1366 = vsyncpa [#allocation5], 1 }
 0x3c3   :  { %1368 = vsyncpa [#allocation5 + $0x1], 1 }
 0x3c4   :  { %1369 = vsyncpa [#allocation7], 1 }

</bundles_post_ra>
